<compile_context>
chip_gen: v7x
topology: tpu7x:2x2x1
jax: 0.10.0
libtpu: 0.0.40
codegen_flags: <defaults>
</compile_context>

<pallas_src>
import jax
import jax.numpy as jnp
from jax.experimental import pallas as pl
from jax.experimental.pallas import tpu as pltpu


def _bias_add_kernel(x_ref, b_ref, o_ref):
    # x_ref: (tile_r, tile_hw); b_ref: (tile_r, 1) -> broadcasts over lanes.
    o_ref[...] = x_ref[...] + b_ref[...]


def _round_up(a, b):
    return pl.cdiv(a, b) * b


def bias_forward(x, bias, *, block_bytes=None, donate=False):
    """x: (N, C, H, W); bias: (1, C, 1, 1). Returns x + bias (NCHW)."""
    n, c, h, w = x.shape
    hw = h * w
    rows = n * c
    itemsize = jnp.dtype(x.dtype).itemsize
    sub = (8 * 4) // itemsize  # sublane pack: 8 f32 / 16 bf16 / 32 int8

    if block_bytes is None:
        try:
            kind = jax.devices()[0].device_kind.lower()
        except Exception:
            kind = ""
        # v5e: 16 MiB scoped-VMEM default -> keep blocks ~2 MiB.
        # v6e/v7x: 4 MiB blocks (4 buffers = 16 MiB) fit the 32 MiB default.
        block_bytes = (2 << 20) if "v5" in kind else (4 << 20)

    row_bytes = hw * itemsize

    if sub * row_bytes <= block_bytes:
        # --- Preferred row-tiled path: block = (tile_r, full HW). ----------
        # Contiguous DMA per block; last dim equals the full array dim, so it
        # is legal for any HW (no 128-divisibility, no padding, no slicing).
        tile_hw = hw
        if rows <= sub:
            tile_r = rows  # block equals full dim -> legal even if < 8
        else:
            budget_r = max(sub, (block_bytes // row_bytes) // sub * sub)
            # Keep >= ~8 grid steps so v7x's 2 TensorCores both get work and
            # the DMA pipeline has enough steps to overlap.
            parallel_r = max(sub, _round_up(pl.cdiv(rows, 8), sub))
            tile_r = max(sub, min(budget_r, parallel_r))
    else:
        # --- Fallback (very large HW): lane-dense HW tiling. ---------------
        # The ragged boundary block (if HW % tile_hw != 0) is masked by
        # Pallas; still no wrapper pad/slice.
        tile_r = rows if rows < sub else sub
        tile_hw = max(128, (block_bytes // (tile_r * itemsize)) // 128 * 128)
        tile_hw = min(tile_hw, _round_up(hw, 128))

    grid = (pl.cdiv(rows, tile_r), pl.cdiv(hw, tile_hw))

    x2 = x.reshape(rows, hw)
    # Per-row bias (tiny: N*C elements); row = b * C + ch  ->  bias[ch].
    b2 = (
        jnp.broadcast_to(bias.reshape(1, c), (n, c))
        .reshape(rows, 1)
        .astype(x.dtype)
    )

    out2 = pl.pallas_call(
        _bias_add_kernel,
        out_shape=jax.ShapeDtypeStruct((rows, hw), x.dtype),
        grid_spec=pltpu.PrefetchScalarGridSpec(
            num_scalar_prefetch=0,
            grid=grid,
            in_specs=[
                pl.BlockSpec((tile_r, tile_hw), lambda i, j: (i, j)),
                pl.BlockSpec((tile_r, 1), lambda i, j: (i, 0)),
            ],
            out_specs=pl.BlockSpec((tile_r, tile_hw), lambda i, j: (i, j)),
        ),
        compiler_params=pltpu.CompilerParams(
            # Pure elementwise op: both axes parallel (lets v7x shard the grid
            # across its 2 TensorCores; harmless on v5e/v6e).
            dimension_semantics=("parallel", "parallel"),
        ),
        # Only alias when the caller actually donates x; otherwise XLA would
        # insert a defensive copy.
        input_output_aliases=({0: 0} if donate else {}),
    )(x2, b2)

    return out2.reshape(n, c, h, w)


if __name__ == "__main__":
    key = jax.random.PRNGKey(0)
    kx, kb, kx2, kx3 = jax.random.split(key, 4)

    # Test 1: shapes consistent with the module: N=2, C=4, H=W=16.
    N, C, H, W = 2, 4, 16, 16
    x = jax.random.normal(kx, (N, C, H, W), dtype=jnp.float32)
    # Module initializes bias to zeros; use nonzero deterministic bias so the
    # broadcast path is actually exercised.
    bias_param = jax.random.normal(kb, (1, C, 1, 1), dtype=jnp.float32)

    out = jax.block_until_ready(bias_forward(x, bias_param))
    ref = x + bias_param
    assert out.shape == (N, C, H, W)
    assert jnp.allclose(out, ref, atol=1e-6, rtol=1e-6)

    # Test 2: ragged spatial size (HW not a multiple of 128). With full-HW
    # row tiling there is no pad and no post-slice.
    H2, W2 = 9, 7
    x2 = jax.random.normal(kx2, (N, C, H2, W2), dtype=jnp.float32)
    out2 = jax.block_until_ready(bias_forward(x2, bias_param))
    ref2 = x2 + bias_param
    assert out2.shape == (N, C, H2, W2)
    assert jnp.allclose(out2, ref2, atol=1e-6, rtol=1e-6)

    # Test 3: N*C not a multiple of the sublane pack -> masked boundary row
    # block.
    C3 = 5
    bias3 = jax.random.normal(kb, (1, C3, 1, 1), dtype=jnp.float32)
    x3 = jax.random.normal(kx3, (N, C3, H, W), dtype=jnp.float32)
    out3 = jax.block_until_ready(bias_forward(x3, bias3))
    ref3 = x3 + bias3
    assert out3.shape == (N, C3, H, W)
    assert jnp.allclose(out3, ref3, atol=1e-6, rtol=1e-6)

    # Test 4: force the HW-tiled fallback path with a tiny block budget.
    out4 = jax.block_until_ready(bias_forward(x, bias_param, block_bytes=4096))
    assert out4.shape == (N, C, H, W)
    assert jnp.allclose(out4, ref, atol=1e-6, rtol=1e-6)

    print("KERNEL_OK")
</pallas_src>

<mosaic_0001>
module attributes {stable_mosaic.version = 11 : i64} {
  func.func @_bias_add_kernel(%arg0: i32, %arg1: i32, %arg2: memref<8x256xf32, #tpu.memory_space<vmem>>, %arg3: memref<8x1xf32, #tpu.memory_space<vmem>>, %arg4: memref<8x256xf32, #tpu.memory_space<vmem>>) attributes {dimension_semantics = [#tpu.dimension_semantics<parallel>, #tpu.dimension_semantics<parallel>], iteration_bounds = array<i64: 1, 1>, scalar_prefetch = 0 : i64, scratch_operands = 0 : i64, tpu.core_type = #tpu.core_type<tc>, window_params = [{transform_indices = @transform_0, window_bounds = array<i64: 8, 256>}, {transform_indices = @transform_1, window_bounds = array<i64: 8, 1>}, {transform_indices = @transform_2, window_bounds = array<i64: 8, 256>}]} {
    %c0 = arith.constant 0 : index
    %c0_0 = arith.constant 0 : index
    %0 = vector.load %arg2[%c0, %c0_0] : memref<8x256xf32, #tpu.memory_space<vmem>>, vector<8x256xf32>
    %c0_1 = arith.constant 0 : index
    %c0_2 = arith.constant 0 : index
    %1 = vector.load %arg3[%c0_1, %c0_2] : memref<8x1xf32, #tpu.memory_space<vmem>>, vector<8x1xf32>
    %2 = vector.broadcast %1 : vector<8x1xf32> to vector<8x256xf32>
    %3 = arith.addf %0, %2 : vector<8x256xf32>
    %c0_3 = arith.constant 0 : index
    %c0_4 = arith.constant 0 : index
    %4 = vector.load %arg4[%c0_3, %c0_4] : memref<8x256xf32, #tpu.memory_space<vmem>>, vector<8x256xf32>
    tpu.vector_store %arg4[%c0_3, %c0_4], %3 {strides = array<i32>} : memref<8x256xf32, #tpu.memory_space<vmem>>, vector<8x256xf32>,
    return
  }
  func.func @transform_0(%arg0: i32, %arg1: i32) -> (i32, i32) {
    %c0_i32 = arith.constant 0 : i32
    return %arg0, %arg1 : i32, i32
  }
  func.func @transform_1(%arg0: i32, %arg1: i32) -> (i32, i32) {
    %c0_i32 = arith.constant 0 : i32
    %c0_i32_0 = arith.constant 0 : i32
    return %arg0, %c0_i32 : i32, i32
  }
  func.func @transform_2(%arg0: i32, %arg1: i32) -> (i32, i32) {
    %c0_i32 = arith.constant 0 : i32
    return %arg0, %arg1 : i32, i32
  }
}

</mosaic_0001>

<bundles_post_ra>
// kernel: tpu_custom_call.1
= control target key start
LH: loop header
LB: loop body
LE: loop exit
PB: predicated region body
PF: predicated region fallthrough
CT: control target
= control target key end

     0   :  { %7 = vsyncpa [#allocation3], 0  ;;  %s148_s0 = inlined_call_operand.hbm [shape: f32[8,256], index: 0, kind: input, shape index: {}]   ;;  %s149_s1 = inlined_call_operand.vmem [shape: f32[8,1], index: 1, kind: input, shape index: {}]   ;;  %s150_s2 = inlined_call_operand.hbm [shape: f32[8,256], index: 2, kind: output, shape index: {}]  }
   0x1   :  { %8 = vsyncpa [#allocation4], 0  ;;  %s103_s9 = smov [#allocation2]   ;;  %s55_s13 = scalar_lea.hbm %s148_s0, 256 }
   0x2   :  { %s15_s10 = sshll.u32 %s103_s9, 4  ;;  %p56_p0 = scmp.ne.s32.totalorder %s148_s0, %s55_s13  ;;  %s16_s10 = int_to_ptr.vmem [resolvable:$true] %s15_s10 }
   0x3   :  { %p59_p1 = scmp.lt.u32.totalorder %s55_s13, %s148_s0 }
   0x5   :  { %p61_p2 = pnand %p59_p1, %p56_p0 }
   0x7   :  { %64 = shalt.err (!%p61_p2)
}
   0x8   :  { %s65_s18 = scalar_lea.vmem %s16_s10, 256  ;;  %p70_p4 = scmp.lt.s32.totalorder %s16_s10, %s16_s10 }
   0x9   :  { %p66_p3 = scmp.ne.s32.totalorder %s16_s10, %s65_s18  ;;  %p71_p5 = scmp.lt.s32.totalorder %s65_s18, %s65_s18 }
   0xb   :  { %p72_p6 = por %p71_p5, %p70_p4 }
   0xd   :  { %p73_p7 = pnand %p72_p6, %p66_p3 }
   0xf   :  { %76 = shalt.err (!%p73_p7)
}
  0x10   :  { %18 = dma.hbm_to_vmem [thread:$0]  %s148_s0, 256, %s16_s10, [#allocation3]  }
  0x11   :  { %99 = dma.done.wait [#allocation3], 256  }
  0x12   :  { %100 = vsyncadd [#allocation3], 4294967040  ;;  %v104_v0 = vmov 0   ;;  %v26_v1 = vld [vmem:[%s149_s1] sm:$0xff]  ;;  %v25_v3 = vld [vmem:[#allocation2 + $0x8] sm:$0xff]  ;;  %s105_s23 = smov [#allocation5]  }
  0x13   :  { %54 = vset.pattern.permute.xlu0 %v104_v0  ;;  %v24_v2 = vld [vmem:[#allocation2] sm:$0xff]  ;;  %s42_s24 = sshll.u32 %s105_s23, 4  ;;  %s43_s24 = int_to_ptr.vmem [resolvable:$true] %s42_s24 }
  0x14   :  { %29 = vperm.xlu0 %54, %v26_v1   ;;  %s77_s0 = scalar_lea.vmem %s43_s24, 256  ;;  %p82_p9 = scmp.lt.s32.totalorder %s43_s24, %s43_s24 }
  0x15   :  { %p78_p8 = scmp.ne.s32.totalorder %s43_s24, %s77_s0  ;;  %p83_p10 = scmp.lt.s32.totalorder %s77_s0, %s77_s0 }
  0x17   :  { %p84_p11 = por %p83_p10, %p82_p9 }
  0x19   :  { %p85_p12 = pnand %p84_p11, %p78_p8 }
  0x93   :  { %v30_v4 = vpop.permute.xlu0 %29 }
  0x94   :  { %v32_v5 = vadd.f32 %v30_v4, %v24_v2  ;;  %v33_v6 = vadd.f32 %v30_v4, %v25_v3 }
  0x96   :  { %34 = vst [vmem:[#allocation5] sm:$0xff] %v32_v5  ;;  %35 = vst [vmem:[#allocation5 + $0x8] sm:$0xff] %v33_v6 }
  0x97   :  { %88 = shalt.err (!%p85_p12)
}
  0x98   :  { %s89_s26 = scalar_lea.hbm %s150_s2, 256 }
  0x99   :  { %p90_p13 = scmp.ne.s32.totalorder %s150_s2, %s89_s26  ;;  %p93_p0 = scmp.lt.u32.totalorder %s89_s26, %s150_s2 }
  0x9b   :  { %p95_p1 = pnand %p93_p0, %p90_p13 }
  0x9d   :  { %98 = shalt.err (!%p95_p1)
}
  0x9e   :  { %45 = dma.vmem_to_hbm [thread:$0]  %s43_s24, 256, %s150_s2, [#allocation4]  }
  0x9f   :  { %101 = dma.done.wait [#allocation4], 256  }
  0xa0   :  { %102 = vsyncadd [#allocation4], 4294967040 }
  0xa1   :  { %49 = vsyncpa [#allocation3], 1 }
  0xa2   :  { %50 = vsyncpa [#allocation4], 1 }

</bundles_post_ra>
